<compile_context>
chip_gen: v5e
topology: v5e:2x2
jax: 0.10.0
libtpu: 0.0.40
codegen_flags: <defaults>
</compile_context>

<pallas_src>
import functools

import jax
import jax.numpy as jnp
from jax.experimental import pallas as pl
from jax.experimental.pallas import tpu as pltpu


def _round_up(x, m):
    return ((x + m - 1) // m) * m


def _downsampling_kernel(x_ref, w_ref, aux_ref, o_ref, *, c_in, n_conv, has_pool):
    # x_ref  : (1, 9*c_in, t)   stride-2 conv taps, channel-stacked, pool taps first
    # w_ref  : (n_conv, 9*c_in) conv weight with BN scale folded in (f32)
    # aux_ref: (n_out, 3)       columns = [bn shift, bn scale (pool rows), prelu alpha]
    # o_ref  : (1, n_out, t)
    x = x_ref[0]                                    # native dtype, no slab upcast

    # 3x3 stride-2 conv == one MXU matmul over the 9 stacked taps (f32 accum).
    conv = jnp.dot(w_ref[...], x, preferred_element_type=jnp.float32)  # (n_conv, t)

    aux = aux_ref[...]
    shift = aux[:, 0:1]
    alpha = aux[:, 2:3]

    z_conv = conv + shift[:n_conv]                  # BN scale already folded into w
    if has_pool:
        # MaxPool2d(2,2) of the ORIGINAL input == elementwise max of the four
        # taps stacked first: channel rows [0, 4*c_in).
        p = jnp.maximum(
            jnp.maximum(x[0 * c_in:1 * c_in], x[1 * c_in:2 * c_in]),
            jnp.maximum(x[2 * c_in:3 * c_in], x[3 * c_in:4 * c_in]))
        scale_pool = aux[n_conv:, 1:2]
        z_pool = p.astype(jnp.float32) * scale_pool + shift[n_conv:]
        z = jnp.concatenate([z_conv, z_pool], axis=0)   # one full-tile store
    else:
        z = z_conv

    o_ref[0] = jnp.where(z >= 0, z, alpha * z).astype(o_ref.dtype)


def downsampling_block(x, conv_w, bn_gamma, bn_beta, bn_mean, bn_var,
                       prelu_alpha, *, eps=1e-3):
    """Pallas TPU forward of SEDNet DownSamplingBlock (inference-mode BN)."""
    N, c_in, H, W = x.shape
    n_conv = conv_w.shape[0]
    n_out = bn_gamma.shape[0]
    has_pool = c_in < n_out
    if has_pool:
        assert n_out == n_conv + c_in
        assert H % 2 == 0 and W % 2 == 0, "concat branch requires even H, W"
    else:
        assert n_out == n_conv

    h_out = (H + 2 - 3) // 2 + 1
    w_out = (W + 2 - 3) // 2 + 1
    hw = h_out * w_out

    # Tap order: the 4 max-pool taps first (contiguous, 0-aligned), then the rest.
    tap_order = ((1, 1), (1, 2), (2, 1), (2, 2),
                 (0, 0), (0, 1), (0, 2), (1, 0), (2, 0))

    # ---- lane tiling: multiple of 128, <=1024, per-step in+out slab <= ~4 MiB
    itemsize = jnp.dtype(x.dtype).itemsize
    row_bytes = (9 * c_in + n_out) * itemsize
    budget = 4 * 1024 * 1024
    lanes_cap = max(128, (budget // max(row_bytes, 1)) // 128 * 128)
    hw_tile = max(128, min(1024, lanes_cap, _round_up(hw, 128)))
    hw_pad = _round_up(hw, hw_tile)
    # Keep >=2 grid steps when possible so both v7x TensorCores get work.
    if N * (hw_pad // hw_tile) < 2 and hw_tile > 128:
        hw_tile = max(128, (hw_tile // 2) // 128 * 128)
        hw_pad = _round_up(hw, hw_tile)
    grid = (N, hw_pad // hw_tile)

    # ---- layout plumbing (wrapper side; fused into the kernel operand read
    # via allow_input_fusion whenever XLA supports it).
    xpad = jnp.pad(x, ((0, 0), (0, 0), (1, 1), (1, 1)))
    taps = jnp.stack(
        [xpad[:, :, kh:kh + 2 * h_out:2, kw:kw + 2 * w_out:2] for kh, kw in tap_order],
        axis=1)                                           # (N, 9, C, h_out, w_out)
    taps = taps.reshape(N, 9 * c_in, hw)
    if hw_pad != hw:
        taps = jnp.pad(taps, ((0, 0), (0, 0), (0, hw_pad - hw)))

    # Fold inference BN into per-channel scale/shift; fold the conv-row scale
    # straight into the flattened conv weight.
    scale = (bn_gamma / jnp.sqrt(bn_var + eps)).astype(jnp.float32)
    shift = (bn_beta - bn_mean * scale).astype(jnp.float32)

    w_taps = jnp.stack([conv_w[:, :, kh, kw] for kh, kw in tap_order], axis=1)
    w_taps = w_taps.reshape(n_conv, 9 * c_in).astype(jnp.float32)
    w2 = w_taps * scale[:n_conv, None]

    scale_col = jnp.concatenate(
        [jnp.ones((n_conv,), jnp.float32), scale[n_conv:]])      # pool-row scales
    aux = jnp.stack([shift, scale_col, prelu_alpha.astype(jnp.float32)], axis=1)

    kernel = functools.partial(_downsampling_kernel, c_in=c_in, n_conv=n_conv,
                               has_pool=has_pool)

    out_flat = pl.pallas_call(
        kernel,
        out_shape=jax.ShapeDtypeStruct((N, n_out, hw_pad), x.dtype),
        grid=grid,
        in_specs=[
            pl.BlockSpec((1, 9 * c_in, hw_tile), lambda n, s: (n, 0, s)),
            pl.BlockSpec((n_conv, 9 * c_in), lambda n, s: (0, 0)),
            pl.BlockSpec((n_out, 3), lambda n, s: (0, 0)),
        ],
        out_specs=pl.BlockSpec((1, n_out, hw_tile), lambda n, s: (n, 0, s)),
        compiler_params=pltpu.CompilerParams(
            dimension_semantics=("parallel", "parallel"),
            # Let XLA fuse the tap construction (pad / strided slice / stack)
            # into the Pallas operand read instead of materializing a
            # 2.25x-sized taps array in HBM.
            allow_input_fusion=[True, False, False]),
    )(taps, w2, aux)

    return out_flat[:, :, :hw].reshape(N, n_out, h_out, w_out)


def downsampling_block_ref(x, conv_w, bn_gamma, bn_beta, bn_mean, bn_var,
                           prelu_alpha, *, eps=1e-3):
    """Pure-JAX reference mirroring the PyTorch forward (inference BN)."""
    n_out = bn_gamma.shape[0]
    conv = jax.lax.conv_general_dilated(
        x, conv_w, window_strides=(2, 2), padding=((1, 1), (1, 1)),
        dimension_numbers=("NCHW", "OIHW", "NCHW"))
    if x.shape[1] < n_out:
        mp = jax.lax.reduce_window(x, -jnp.inf, jax.lax.max,
                                   (1, 1, 2, 2), (1, 1, 2, 2), "VALID")
        out = jnp.concatenate([conv, mp], axis=1)
    else:
        out = conv
    scale = bn_gamma / jnp.sqrt(bn_var + eps)
    shift = bn_beta - bn_mean * scale
    z = out * scale[None, :, None, None] + shift[None, :, None, None]
    return jnp.where(z >= 0, z, prelu_alpha[None, :, None, None] * z)


def _make_params(key, c_in, n_out):
    n_conv = n_out - c_in if c_in < n_out else n_out
    ks = jax.random.split(key, 6)
    conv_w = jax.random.normal(ks[0], (n_conv, c_in, 3, 3), jnp.float32) * 0.2
    gamma = 1.0 + 0.1 * jax.random.normal(ks[1], (n_out,), jnp.float32)
    beta = 0.1 * jax.random.normal(ks[2], (n_out,), jnp.float32)
    rmean = 0.1 * jax.random.normal(ks[3], (n_out,), jnp.float32)
    rvar = jax.random.uniform(ks[4], (n_out,), jnp.float32, minval=0.5, maxval=1.5)
    alpha = jnp.full((n_out,), 0.25, jnp.float32)
    return conv_w, gamma, beta, rmean, rvar, alpha


if __name__ == "__main__":
    key = jax.random.PRNGKey(0)
    k1, k2, k3, k4 = jax.random.split(key, 4)

    # Case 1: nIn < nOut  (conv3x3 + max-pool + concat + BN/PReLU)
    N, c_in, H, W = 2, 4, 16, 16
    n_out = 8
    x = jax.random.normal(k1, (N, c_in, H, W), jnp.float32)
    params = _make_params(k2, c_in, n_out)
    out = jax.block_until_ready(downsampling_block(x, *params))
    ref = downsampling_block_ref(x, *params)
    assert out.shape == (N, n_out, H // 2, W // 2)
    assert jnp.allclose(out, ref, atol=1e-4, rtol=1e-4), float(jnp.max(jnp.abs(out - ref)))

    # Case 2: nIn >= nOut  (conv3x3 only + BN/PReLU)
    c_in2, n_out2 = 8, 4
    x2 = jax.random.normal(k3, (N, c_in2, H, W), jnp.float32)
    params2 = _make_params(k4, c_in2, n_out2)
    out2 = jax.block_until_ready(downsampling_block(x2, *params2))
    ref2 = downsampling_block_ref(x2, *params2)
    assert out2.shape == (N, n_out2, H // 2, W // 2)
    assert jnp.allclose(out2, ref2, atol=1e-4, rtol=1e-4), float(jnp.max(jnp.abs(out2 - ref2)))

    print("KERNEL_OK")
</pallas_src>

<mosaic_0001>
module attributes {stable_mosaic.version = 11 : i64} {
  func.func @_downsampling_kernel(%arg0: i32, %arg1: i32, %arg2: memref<1x36x128xf32, #tpu.memory_space<vmem>>, %arg3: memref<4x36xf32, #tpu.memory_space<vmem>>, %arg4: memref<8x3xf32, #tpu.memory_space<vmem>>, %arg5: memref<1x8x128xf32, #tpu.memory_space<vmem>>) attributes {dimension_semantics = [#tpu.dimension_semantics<parallel>, #tpu.dimension_semantics<parallel>], iteration_bounds = array<i64: 2, 1>, scalar_prefetch = 0 : i64, scratch_operands = 0 : i64, tpu.core_type = #tpu.core_type<tc>, window_params = [{transform_indices = @transform_0, window_bounds = array<i64: 1, 36, 128>}, {pipeline_mode = #tpu.pipeline_mode<synchronous>, transform_indices = @transform_1, window_bounds = array<i64: 4, 36>}, {pipeline_mode = #tpu.pipeline_mode<synchronous>, transform_indices = @transform_2, window_bounds = array<i64: 8, 3>}, {transform_indices = @transform_3, window_bounds = array<i64: 1, 8, 128>}]} {
    %c0 = arith.constant 0 : index
    %c0_0 = arith.constant 0 : index
    %c0_1 = arith.constant 0 : index
    %0 = vector.load %arg2[%c0, %c0_0, %c0_1] : memref<1x36x128xf32, #tpu.memory_space<vmem>>, vector<1x36x128xf32>
    %1 = vector.shape_cast %0 : vector<1x36x128xf32> to vector<36x128xf32>
    %c0_2 = arith.constant 0 : index
    %c0_3 = arith.constant 0 : index
    %2 = vector.load %arg3[%c0_2, %c0_3] : memref<4x36xf32, #tpu.memory_space<vmem>>, vector<4x36xf32>
    %cst = arith.constant dense<0.000000e+00> : vector<4x128xf32>
    %3 = tpu.matmul %2, %1, %cst {dimension_numbers = #tpu.dot_dimension_numbers<[1], [0], [0], [1], [0, 0, 1, 1], [], []>} : vector<4x36xf32>, vector<36x128xf32>, vector<4x128xf32> -> vector<4x128xf32>
    %c0_4 = arith.constant 0 : index
    %c0_5 = arith.constant 0 : index
    %4 = vector.load %arg4[%c0_4, %c0_5] : memref<8x3xf32, #tpu.memory_space<vmem>>, vector<8x3xf32>
    %5 = vector.extract_strided_slice %4 {offsets = [0, 0], sizes = [8, 1], strides = [1, 1]} : vector<8x3xf32> to vector<8x1xf32>
    %6 = vector.extract_strided_slice %4 {offsets = [0, 2], sizes = [8, 1], strides = [1, 1]} : vector<8x3xf32> to vector<8x1xf32>
    %7 = vector.extract_strided_slice %5 {offsets = [0, 0], sizes = [4, 1], strides = [1, 1]} : vector<8x1xf32> to vector<4x1xf32>
    %8 = vector.broadcast %7 : vector<4x1xf32> to vector<4x128xf32>
    %9 = arith.addf %3, %8 : vector<4x128xf32>
    %10 = vector.extract_strided_slice %1 {offsets = [0, 0], sizes = [4, 128], strides = [1, 1]} : vector<36x128xf32> to vector<4x128xf32>
    %11 = vector.extract_strided_slice %1 {offsets = [4, 0], sizes = [4, 128], strides = [1, 1]} : vector<36x128xf32> to vector<4x128xf32>
    %12 = arith.maximumf %10, %11 : vector<4x128xf32>
    %13 = vector.extract_strided_slice %1 {offsets = [8, 0], sizes = [4, 128], strides = [1, 1]} : vector<36x128xf32> to vector<4x128xf32>
    %14 = vector.extract_strided_slice %1 {offsets = [12, 0], sizes = [4, 128], strides = [1, 1]} : vector<36x128xf32> to vector<4x128xf32>
    %15 = arith.maximumf %13, %14 : vector<4x128xf32>
    %16 = arith.maximumf %12, %15 : vector<4x128xf32>
    %17 = vector.extract_strided_slice %4 {offsets = [4, 1], sizes = [4, 1], strides = [1, 1]} : vector<8x3xf32> to vector<4x1xf32>
    %18 = vector.broadcast %17 : vector<4x1xf32> to vector<4x128xf32>
    %19 = arith.mulf %16, %18 : vector<4x128xf32>
    %20 = vector.extract_strided_slice %5 {offsets = [4, 0], sizes = [4, 1], strides = [1, 1]} : vector<8x1xf32> to vector<4x1xf32>
    %21 = vector.broadcast %20 : vector<4x1xf32> to vector<4x128xf32>
    %22 = arith.addf %19, %21 : vector<4x128xf32>
    %23 = tpu.concatenate %9, %22 in 0 : vector<4x128xf32>, vector<4x128xf32> -> vector<8x128xf32>
    %cst_6 = arith.constant 0.000000e+00 : f32
    %24 = vector.broadcast %cst_6 : f32 to vector<8x128xf32>
    %25 = arith.cmpf oge, %23, %24 : vector<8x128xf32>
    %26 = vector.broadcast %6 : vector<8x1xf32> to vector<8x128xf32>
    %27 = arith.mulf %26, %23 : vector<8x128xf32>
    %28 = arith.select %25, %23, %27 : vector<8x128xi1>, vector<8x128xf32>
    %c0_7 = arith.constant 0 : index
    %c0_8 = arith.constant 0 : index
    %c0_9 = arith.constant 0 : index
    %29 = vector.load %arg5[%c0_7, %c0_8, %c0_9] : memref<1x8x128xf32, #tpu.memory_space<vmem>>, vector<1x8x128xf32>
    %30 = vector.shape_cast %29 : vector<1x8x128xf32> to vector<8x128xf32>
    %31 = vector.shape_cast %28 : vector<8x128xf32> to vector<1x8x128xf32>
    tpu.vector_store %arg5[%c0_7, %c0_8, %c0_9], %31 {strides = array<i32>} : memref<1x8x128xf32, #tpu.memory_space<vmem>>, vector<1x8x128xf32>,
    return
  }
  func.func @transform_0(%arg0: i32, %arg1: i32) -> (i32, i32, i32) {
    %c0_i32 = arith.constant 0 : i32
    %c0_i32_0 = arith.constant 0 : i32
    return %arg0, %c0_i32, %arg1 : i32, i32, i32
  }
  func.func @transform_1(%arg0: i32, %arg1: i32) -> (i32, i32) {
    %c0_i32 = arith.constant 0 : i32
    %c0_i32_0 = arith.constant 0 : i32
    %c0_i32_1 = arith.constant 0 : i32
    return %c0_i32, %c0_i32_0 : i32, i32
  }
  func.func @transform_2(%arg0: i32, %arg1: i32) -> (i32, i32) {
    %c0_i32 = arith.constant 0 : i32
    %c0_i32_0 = arith.constant 0 : i32
    %c0_i32_1 = arith.constant 0 : i32
    return %c0_i32, %c0_i32_0 : i32, i32
  }
  func.func @transform_3(%arg0: i32, %arg1: i32) -> (i32, i32, i32) {
    %c0_i32 = arith.constant 0 : i32
    %c0_i32_0 = arith.constant 0 : i32
    return %arg0, %c0_i32, %arg1 : i32, i32, i32
  }
}

</mosaic_0001>

<bundles_post_ra>
// kernel: tpu_custom_call.1
= control target key start
LH: loop header
LB: loop body
LE: loop exit
PB: predicated region body
PF: predicated region fallthrough
CT: control target
= control target key end

     0   :  { %8 = vsyncpa [#allocation3], 0  ;;  %s639_s0 = inlined_call_operand.vmem [shape: f32[2,36,128], index: 0, kind: input, shape index: {}]   ;;  %s640_s1 = inlined_call_operand.vmem [shape: f32[4,36], index: 1, kind: input, shape index: {}]   ;;  %s641_s2 = inlined_call_operand.vmem [shape: f32[8,3], index: 2, kind: input, shape index: {}]   ;;  %s642_s3 = inlined_call_operand.hbm [shape: f32[2,8,128], index: 3, kind: output, shape index: {}]  }
   0x1   :  { %10 = vsyncpa [#allocation3 + $0x1], 0  ;;  %s534_s12 = smov 0   ;;  %s536_s13 = smov 0  }
   0x2   :  { %s538_s14 = smov 0   ;;  %s540_s15 = smov 0  }
   0x3   :  { %s542_s16 = smov 0   ;;  %s544_s17 = smov 0  }
   0x4 LB: > { %s355_s18 = sadd.s32 4294967295, %s509_s17   ;;  %s356_s19 = sadd.s32 4294967294, %s509_s17   ;;  %s509_s17 = sphi %s544_s17, %s16_s17   ;;  %s505_s16 = sphi %s542_s16, %s649_s16   ;;  %s501_s15 = sphi %s540_s15, %s648_s15   ;;  %s497_s14 = sphi %s538_s14, %s647_s14   ;;  %s493_s13 = sphi %s536_s13, %s646_s13   ;;  %s489_s12 = sphi %s534_s12, %s645_s12  }
   0x5   : > { %s28_s20 = sadd.s32 1, %s505_s16  ;;  %s107_s21 = sadd.s32 1, %s497_s14 }
   0x6   : > { %p30_p0 = scmp.ge.s32.totalorder %s28_s20, 2  ;;  %p117_p1 = scmp.ne.s32.totalorder %s497_s14, %s493_s13 }
   0x7   : > { %p118_p2 = scmp.eq.s32.totalorder %s355_s18, 1  ;;  %p123_p3 = scmp.ne.s32.totalorder %s493_s13, %s489_s12 }
   0x8   : > { %s651_s20 = smov (%p30_p0, %s28_s20), 0  ;;  %p124_p5 = scmp.eq.s32.totalorder %s356_s19, 1 }
   0x9   : > { %p574_p4 = por %p118_p2, %p117_p1  ;;  %s102_s23 = ssub.s32 %s505_s16, %s651_s20 }
   0xa   : > { %p359_p6 = scmp.ge.s32.totalorder %s509_s17, 1  ;;  %p105_p7 = scmp.eq.s32.totalorder %s102_s23, 0 }
   0xb   : > { %p581_p8 = por %p124_p5, %p123_p3  ;;  %p159_p9 = scmp.lt.s32.totalorder %s509_s17, 3 }
   0xc   : > { %s587_s25 = scalar_select %p105_p7, %s497_s14, %s107_s21  }
   0xd   : > { %p160_p10 = pnand %p359_p6, %p159_p9 }
   0xe   : > { %p186_p11 = scmp.lt.s32.totalorder (!%p160_p10), %s501_s15, 1  ;;  %s183_s8 = sand.u32 (!%p160_p10), 1, %s493_s13  }
   0xf   : > { %163 = sbr.rel (%p160_p10) target bundleno = 170 (0xaa), region = 32  ;;  %s360_s9 = sshll.u32 (!%p160_p10), %s183_s8, 3 }
  0x10   : > { %s365_s10 = sshll.u32 (!%p160_p10), %s501_s15, 3  ;;  %s185_s21 = scalar_lea.vmem (!%p160_p10), [#allocation2], %s360_s9 }
  0x11   : > { %s276_s19 = scalar_lea.hbm (!%p160_p10), %s642_s3, %s365_s10  ;;  %s278_s23 = sshll.u32 (!%p160_p10), %s185_s21, 4  ;;  %s279_s23 = int_to_ptr.vmem [resolvable:$true] %s278_s23 }
  0x12   : > { %s280_s26 = sshll.u32 (!%p160_p10), %s276_s19, 4  ;;  %s451_s4 = scalar_lea.hbm (!%p160_p10), %s642_s3, 16  ;;  %s281_s26 = int_to_ptr.hbm [resolvable:$true] %s280_s26 }
  0x13   : > { %s445_s27 = sshra.s32 (!%p160_p10), %s281_s26, 4  ;;  %s446_s27 = int_to_ptr.hbm [resolvable:$true] %s445_s27 }
  0x14   : > { %v200_v0 = vld [vmem:[%s641_s2] sm:$0xff]  ;;  %v511_v1 = vmov 1   ;;  %s187_s28 = scalar_select %p186_p11, %s501_s15, 1  ;;  %v512_v2 = vmov 2   ;;  %vm210_vm0 = vcmask 1043456   ;;  %v513_v6 = vmov 0  }
  0x15   : > { %427 = vset.pattern.permute.xlu0 %v511_v1  ;;  %429 = vset.pattern.permute.xlu1 %v512_v2  ;;  %v199_v9 = vld [vmem:[%s640_s1] sm:$0xf]  ;;  %vm206_vm1 = vcmask 293888   ;;  %s265_s15 = scalar_lea.sflag [#allocation3], %s183_s8  ;;  %p452_p1 = scmp.lt.s32.totalorder %s446_s27, %s642_s3 }
  0x16   : > { %244 = vperm.xlu0 %427, %v200_v0   ;;  %258 = vperm.xlu1 %429, %v200_v0   ;;  %s368_s29 = smul.u32 40, %s187_s28  ;;  %s447_s28 = scalar_lea.hbm %s446_s27, 8 }
  0x17   : > { %p448_p12 = scmp.ne.s32.totalorder %s446_s27, %s447_s28  ;;  %p453_p2 = scmp.lt.s32.totalorder %s451_s4, %s447_s28 }
  0x18   : > { %s193_s5 = scalar_lea.vmem %s639_s0, %s368_s29 }
  0x19   : > { %v198_v3 = vld [vmem:[%s193_s5 + $0x20] sm:$0xf]  ;;  %v197_v4 = vld [vmem:[%s193_s5 + $0x18] sm:$0xff]  ;;  %v196_v5 = vld [vmem:[%s193_s5 + $0x10] sm:$0xff]  ;;  %p449_p13 = pnand %p448_p12, %p574_p4  ;;  %p454_p3 = por %p453_p2, %p452_p1 }
  0x1a   : > { %362 = vmatpush.msk.msra.mxu0 %vm210_vm0, %v198_v3  ;;  %v195_v7 = vld [vmem:[%s193_s5 + $0x8] sm:$0xff]  ;;  %v194_v8 = vld [vmem:[%s193_s5] sm:$0xff] }
  0x1b   : > { %v239_v10 = vrot.slane %v195_v7, 4  ;;  %v235_v11 = vrot.slane %v194_v8, 4  ;;  %p450_p0 = pneg %p449_p13 }
  0x1c   : > { %226 = vmatpush.msra.mxu0 %v197_v4 }
  0x1d   : > { %v241_v12 = vmax.f32 %v195_v7, %v239_v10  ;;  %v237_v13 = vmax.f32 %v194_v8, %v235_v11  ;;  %p455_p5 = pnand %p454_p3, %p450_p0 }
  0x1e   : > { %428 = vset.pattern.permute.xlu0 %v513_v6  ;;  %227 = vmatpush.msra.mxu0 %v196_v5 }
  0x1f   : > { %203 = vperm.xlu0 %428, %v200_v0   ;;  %v242_v14 = vmax.f32 %v237_v13, %v241_v12 }
  0x20   : > { %228 = vmatpush.msra.mxu0 %v195_v7 }
  0x22   : > { %229 = vmatpush.msra.mxu0 %v194_v8 }
  0x23   : > { %363 = vmatmul.msk.f32.vlgmr.msra.gmra.mxu0 %vm206_vm1, %v199_v9 }
  0x27   : > { %430 = vset.pattern.permute.xlu0 %v512_v2 }
  0x88   : > { %v245_v15 = vpop.permute.xlu0 %244  ;;  %v259_v24 = vpop.permute.xlu1 %258 }
  0x89   : > { %v246_v16 = vrot.slane %v245_v15, 4 }
  0x8b   : > { %v248_v18 = vmul.f32 %v246_v16, %v242_v14 }
  0x91   : > { %v204_v17 = vpop.permute.xlu0 %203 }
  0x92   : > { %v249_v19 = vrot.slane %v204_v17, 4 }
  0x94   : > { %v251_v20 = vadd.f32 %v249_v19, %v248_v18 }
  0x96   : > { %v253_v22 = vrot.slane %v251_v20, 4 }
  0xa0   : > { %v231_v21 = vpop.f32.mrf.mxu0 }
  0xa1   : > { %v232_v23 = vadd.f32 %v231_v21, %v204_v17 }
  0xa3   : > { %v255_v25 = vsel %vm210_vm0, %v232_v23, %v253_v22 }
  0xa4   : > { %vm256_vm2 = vcmp.ge.f32.partialorder %v255_v25, 0.0  ;;  %v261_v26 = vmul.f32 %v259_v24, %v255_v25 }
  0xa6   : > { %v262_v27 = vsel %vm256_vm2, %v255_v25, %v261_v26 }
  0xa7   : > { %263 = vst [vmem:[%s185_s21] sm:$0xff] %v262_v27 }
  0xa8   : > { %458 = shalt.err (!%p455_p5)
}
  0xa9   : > { %369 = dma.vmem_to_hbm [thread:$0]  (%p574_p4), %s279_s23, 128, %s281_s26, %s265_s15  }
  0xaa PF: > { %p375_p6 = scmp.ge.s32.totalorder %s509_s17, 2  ;;  %s292_s7 = sand.u32 1, %s489_s12  }
  0xab   : > { %s293_s8 = scalar_lea.sflag [#allocation3], %s292_s7 }
  0xac   : > { %p372_p7 = pnand %p375_p6, %p581_p8 }
  0xae   : > { %p373_p9 = pneg %p372_p7 }
  0xb0   : > { %484 = dma.done.wait (%p373_p9), %s293_s8, 128  }
  0xb1   : > { %486 = vsyncadd (%p373_p9), %s293_s8, 4294967168  ;;  %s16_s17 = sadd.s32 1, %s509_s17   ;;  %s645_s12 = smov %s493_s13 }
  0xb2   : > { %p13_p10 = scmp.ge.s32.totalorder %s16_s17, 4   ;;  %s646_s13 = smov %s497_s14 }
  0xb3   : > { %s647_s14 = smov %s587_s25  ;;  %s648_s15 = smov %s505_s16 }
  0xb4   : > { %s649_s16 = smov %s651_s20  ;;  %15 = sbr.rel (!%p13_p10) target bundleno = 4 (0x4), region = 67 }
  0xb9   :  { %299 = vsyncpa [#allocation3], 1 }
  0xba   :  { %301 = vsyncpa [#allocation3 + $0x1], 1 }

</bundles_post_ra>
